<compile_context>
chip_gen: v6e
topology: v6e:2x2x1
jax: 0.10.0
libtpu: 0.0.40
codegen_flags: <defaults>
</compile_context>

<pallas_src>
import jax
import jax.numpy as jnp
from jax.experimental import pallas as pl
from jax.experimental.pallas import tpu as pltpu


def _round_up(a, b):
    return (a + b - 1) // b * b


# --------------------------- params / attention ----------------------------- #
def init_params(key, in_channels_max, out_channels, kernel_size, K):
    k0, k1, k2, k3, k4 = jax.random.split(key, 5)
    return {
        # matches torch.randn(K, out_channels, in_channels_max, k, k)
        "weight_bank": jax.random.normal(
            k0, (K, out_channels, in_channels_max, kernel_size, kernel_size),
            jnp.float32),
        # attn_fc: Linear(Cmax, 64) -> ReLU -> Linear(64, K) -> Softmax
        "fc1_w": 0.1 * jax.random.normal(k1, (64, in_channels_max), jnp.float32),
        "fc1_b": 0.1 * jax.random.normal(k2, (64,), jnp.float32),
        "fc2_w": 0.1 * jax.random.normal(k3, (K, 64), jnp.float32),
        "fc2_b": 0.1 * jax.random.normal(k4, (K,), jnp.float32),
    }


def compute_attention(params, x, in_channels_max):
    # AdaptiveAvgPool2d(1) over the channel-padded input == mean over HW with
    # zeros for the padded channels.  Stays in f32 (tiny).
    B, C, _, _ = x.shape
    pooled = jnp.mean(x, axis=(2, 3))                              # (B, C)
    if C < in_channels_max:
        pooled = jnp.pad(pooled, ((0, 0), (0, in_channels_max - C)))
    h = jax.nn.relu(pooled @ params["fc1_w"].T + params["fc1_b"])
    logits = h @ params["fc2_w"].T + params["fc2_b"]
    return jax.nn.softmax(logits, axis=-1)                         # (B, K)


# ------------------------------ tile selection ------------------------------ #
def _pick_tile(n_cols, c, oc, ks, halo):
    """Largest TM (multiple of 128) that fits the per-generation VMEM budget."""
    try:
        vmem_cap = pltpu.get_tpu_info().vmem_capacity_bytes
    except Exception:
        vmem_cap = None
    if not vmem_cap:
        vmem_cap = 64 * 1024 * 1024        # conservative (v7x physical VMEM)
    budget = int(min(vmem_cap, 128 * 1024 * 1024) * 0.4)  # headroom for scratch
    # Per-step VMEM (double-buffered blocks):
    #   x (resident bf16):  2 * C * (n_cols + 2*halo + TM + 128) * 2 bytes
    #   weights (bf16):     2 * ks*ks * OC * C * 2 bytes
    #   output (f32):       2 * OC * TM * 4 bytes
    fixed = 2 * c * (n_cols + 2 * halo + 128) * 2 + 2 * ks * ks * oc * c * 2
    per_col = 2 * oc * 4 + 2 * c * 2
    if budget <= fixed + 128 * per_col:
        # TODO(synk): for very large C*H*W the whole padded sample no longer
        # fits VMEM; switch to a halo'd row-slab DMA (pl.ANY + make_async_copy)
        # and add an OC / channel grid axis instead of growing the blocks.
        return 128, vmem_cap
    tm = (budget - fixed) // per_col // 128 * 128
    return max(128, min(int(tm), 32768)), vmem_cap


# --------------------------------- forward ---------------------------------- #
def dynamic_conv2d(params, x, *, in_channels_max, out_channels, kernel_size, K):
    """x: NCHW float32 -> NCHW float32 (same semantics as the torch module,
    with bf16 operand quantization + f32 accumulation for the conv matmuls)."""
    B, C, H, W = x.shape
    OC, ks = out_channels, kernel_size
    p = ks // 2
    Hq, Wq = H + 2 * p, W + 2 * p
    N = Hq * Wq                  # output is computed over the padded grid
    HALO = p * Wq + p            # max |flat shift| of any conv tap

    # ---- attention + per-sample weight mixing (f32, tiny) ----
    attn = compute_attention(params, x, in_channels_max)            # (B, K)
    bank = params["weight_bank"][:, :, :C, :, :]                    # (K, OC, C, k, k)
    mixed = jnp.einsum('bk,kocij->bocij', attn, bank)               # (B, OC, C, k, k)
    # TODO(synk): when B >> K, mix inside the kernel instead (grid-invariant
    # (K, ks*ks, OC, C) bank + attn via PrefetchScalarGridSpec) so filter HBM
    # traffic stays at the bank size rather than B/K times larger.
    w = jnp.transpose(mixed, (0, 3, 4, 1, 2)).reshape(B, ks * ks, OC, C)
    w = w.astype(jnp.bfloat16)                                      # (B, k*k, OC, C)

    # ---- tile selection: VMEM-budgeted, lane-dense, >=2 parallel steps ----
    TM, vmem_cap = _pick_tile(N, C, OC, ks, HALO)
    TM = min(TM, _round_up(N, 128))
    nt = (N + TM - 1) // TM
    if B * nt < 2:               # keep >=2 grid steps on a parallel axis (v7x: 2 TCs)
        nt = 2
        TM = _round_up((N + 1) // 2, 128)
    Npad = nt * TM

    # ---- padded, flattened, halo'd input (bf16), DMA'd once per sample ----
    x_q = jnp.pad(x, ((0, 0), (0, 0), (p, p), (p, p))).astype(jnp.bfloat16)
    x_flat = x_q.reshape(B, C, N)
    Lpad = _round_up(Npad + 2 * HALO, 128)
    x_flat = jnp.pad(x_flat, ((0, 0), (0, 0), (HALO, Lpad - HALO - N)))  # (B, C, Lpad)

    # Flat shift of each tap on the padded grid; junk only lands in the pad
    # ring, which the wrapper crops, so no masking is needed.
    shifts = [(dy - p) * Wq + (dx - p) for dy in range(ks) for dx in range(ks)]

    def kernel(w_ref, x_ref, o_ref):
        # w_ref: (1, ks*ks, OC, C) bf16  per-sample taps (invariant over tiles)
        # x_ref: (1, C, Lpad)      bf16  whole padded sample, resident in VMEM
        # o_ref: (1, OC, TM)       f32   lane-dense output tile
        if nt > 1:
            base = pl.multiple_of(pl.program_id(1) * TM, 128)
        else:
            base = 0                      # fully static indexing when one tile
        acc = None
        for o, sh in enumerate(shifts):
            slab = x_ref[0, :, pl.ds(base + (HALO + sh), TM)]        # (C, TM)
            part = jnp.dot(w_ref[0, o], slab,
                           preferred_element_type=jnp.float32)       # (OC, TM)
            acc = part if acc is None else acc + part
        # TODO(synk): emit bf16 here instead of f32 if downstream tolerates it
        # (saves ~OC*HW*2 bytes of HBM writes per sample when mem-bound).
        o_ref[0] = acc

    flops = 2 * B * Npad * ks * ks * OC * C
    bytes_accessed = (B * C * Lpad * 2) + (B * ks * ks * OC * C * 2) + (B * OC * Npad * 4)

    est_vmem = 2 * C * Lpad * 2 + 2 * ks * ks * OC * C * 2 + 2 * OC * TM * 4
    vmem_limit = int(min(0.9 * vmem_cap, max(4 * est_vmem, 32 * 1024 * 1024)))

    out = pl.pallas_call(
        kernel,
        out_shape=jax.ShapeDtypeStruct((B, OC, Npad), jnp.float32),
        grid_spec=pltpu.PrefetchScalarGridSpec(
            num_scalar_prefetch=0,
            grid=(B, nt),
            in_specs=[
                # per-sample mixed taps: constant across the spatial axis
                pl.BlockSpec((1, ks * ks, OC, C), lambda b, m: (b, 0, 0, 0)),
                # whole padded/halo'd sample: DMA'd once per sample, reused
                # across all spatial tiles (no ks^2-inflated patches stream).
                pl.BlockSpec((1, C, Lpad), lambda b, m: (b, 0, 0)),
            ],
            out_specs=pl.BlockSpec((1, OC, TM), lambda b, m: (b, 0, m)),
        ),
        compiler_params=pltpu.CompilerParams(
            dimension_semantics=("parallel", "parallel"),
            vmem_limit_bytes=vmem_limit),
        cost_estimate=pl.CostEstimate(flops=flops, transcendentals=0,
                                      bytes_accessed=bytes_accessed),
    )(w, x_flat)

    # Crop the pad ring of the padded-grid output -> NCHW.
    out = out[:, :, :N].reshape(B, OC, Hq, Wq)[:, :, p:p + H, p:p + W]
    return out


# -------------------------------- reference --------------------------------- #
def reference(params, x, *, in_channels_max, out_channels, kernel_size, K,
              quantize_bf16=False):
    """f32 reference matching the torch module; optional bf16 operand rounding
    to match the kernel's quantization exactly."""
    B, C, H, W = x.shape
    pad = kernel_size // 2
    attn = compute_attention(params, x, in_channels_max)
    bank = params["weight_bank"][:, :, :C, :, :]                    # (K, OC, C, k, k)
    w = jnp.einsum('bk,kocij->bocij', attn, bank)                   # (B, OC, C, k, k)
    xc = x
    if quantize_bf16:
        w = w.astype(jnp.bfloat16).astype(jnp.float32)
        xc = x.astype(jnp.bfloat16).astype(jnp.float32)
    outs = []
    for i in range(B):
        out = jax.lax.conv_general_dilated(
            xc[i:i + 1], w[i], window_strides=(1, 1),
            padding=[(pad, pad), (pad, pad)],
            dimension_numbers=('NCHW', 'OIHW', 'NCHW'),
            precision=jax.lax.Precision.HIGHEST)
        outs.append(out)
    return jnp.concatenate(outs, axis=0)


# ----------------------------------- main ------------------------------------ #
if __name__ == "__main__":
    B, C, H, W = 2, 4, 16, 16
    IN_CH_MAX, OUT_CH, KSIZE, K = 8, 8, 3, 4   # exercises C < in_channels_max

    key = jax.random.PRNGKey(0)
    pkey, xkey = jax.random.split(key)
    params = init_params(pkey, IN_CH_MAX, OUT_CH, KSIZE, K)
    x = jax.random.normal(xkey, (B, C, H, W), jnp.float32)

    out = dynamic_conv2d(params, x, in_channels_max=IN_CH_MAX,
                         out_channels=OUT_CH, kernel_size=KSIZE, K=K)
    out = jax.block_until_ready(out)
    assert out.shape == (B, OUT_CH, H, W), out.shape

    # (1) Tight check vs a reference using the same bf16 operand quantization:
    #     validates the kernel's shift/layout math exactly.
    ref_q = reference(params, x, in_channels_max=IN_CH_MAX, out_channels=OUT_CH,
                      kernel_size=KSIZE, K=K, quantize_bf16=True)
    ref_q = jax.block_until_ready(ref_q)
    assert jnp.allclose(out, ref_q, atol=5e-3, rtol=5e-3), \
        float(jnp.max(jnp.abs(out - ref_q)))

    # (2) Loose check vs the full-f32 module reference (semantics); slack only
    #     covers the intentional bf16 operand cast.
    ref = reference(params, x, in_channels_max=IN_CH_MAX, out_channels=OUT_CH,
                    kernel_size=KSIZE, K=K, quantize_bf16=False)
    ref = jax.block_until_ready(ref)
    assert jnp.allclose(out, ref, atol=2.5e-1, rtol=5e-2), \
        float(jnp.max(jnp.abs(out - ref)))

    print("KERNEL_OK")
</pallas_src>

<mosaic_0001>
module attributes {stable_mosaic.version = 11 : i64} {
  func.func @kernel(%arg0: i32, %arg1: i32, %arg2: memref<1x9x8x4xbf16, #tpu.memory_space<vmem>>, %arg3: memref<1x4x512xbf16, #tpu.memory_space<vmem>>, %arg4: memref<1x8x384xf32, #tpu.memory_space<vmem>>) attributes {dimension_semantics = [#tpu.dimension_semantics<parallel>, #tpu.dimension_semantics<parallel>], iteration_bounds = array<i64: 2, 1>, scalar_prefetch = 0 : i64, scratch_operands = 0 : i64, tpu.core_type = #tpu.core_type<tc>, window_params = [{transform_indices = @transform_0, window_bounds = array<i64: 1, 9, 8, 4>}, {transform_indices = @transform_1, window_bounds = array<i64: 1, 4, 512>}, {transform_indices = @transform_2, window_bounds = array<i64: 1, 8, 384>}]} {
    %c0 = arith.constant 0 : index
    %c0_0 = arith.constant 0 : index
    %c0_1 = arith.constant 0 : index
    %0 = vector.load %arg3[%c0, %c0_0, %c0_1] : memref<1x4x512xbf16, #tpu.memory_space<vmem>>, vector<1x4x384xbf16>
    %1 = vector.shape_cast %0 : vector<1x4x384xbf16> to vector<4x384xbf16>
    %c0_2 = arith.constant 0 : index
    %c0_3 = arith.constant 0 : index
    %c0_4 = arith.constant 0 : index
    %c0_5 = arith.constant 0 : index
    %2 = vector.load %arg2[%c0_2, %c0_3, %c0_4, %c0_5] : memref<1x9x8x4xbf16, #tpu.memory_space<vmem>>, vector<1x1x8x4xbf16>
    %3 = vector.shape_cast %2 : vector<1x1x8x4xbf16> to vector<8x4xbf16>
    %cst = arith.constant dense<0.000000e+00> : vector<8x384xf32>
    %4 = tpu.matmul %3, %1, %cst {dimension_numbers = #tpu.dot_dimension_numbers<[1], [0], [0], [1], [0, 0, 1, 1], [], []>} : vector<8x4xbf16>, vector<4x384xbf16>, vector<8x384xf32> -> vector<8x384xf32>
    %c0_6 = arith.constant 0 : index
    %c0_7 = arith.constant 0 : index
    %c1 = arith.constant 1 : index
    %5 = vector.load %arg3[%c0_6, %c0_7, %c1] : memref<1x4x512xbf16, #tpu.memory_space<vmem>>, vector<1x4x384xbf16>
    %6 = vector.shape_cast %5 : vector<1x4x384xbf16> to vector<4x384xbf16>
    %c0_8 = arith.constant 0 : index
    %c1_9 = arith.constant 1 : index
    %c0_10 = arith.constant 0 : index
    %c0_11 = arith.constant 0 : index
    %7 = vector.load %arg2[%c0_8, %c1_9, %c0_10, %c0_11] : memref<1x9x8x4xbf16, #tpu.memory_space<vmem>>, vector<1x1x8x4xbf16>
    %8 = vector.shape_cast %7 : vector<1x1x8x4xbf16> to vector<8x4xbf16>
    %cst_12 = arith.constant dense<0.000000e+00> : vector<8x384xf32>
    %9 = tpu.matmul %8, %6, %cst_12 {dimension_numbers = #tpu.dot_dimension_numbers<[1], [0], [0], [1], [0, 0, 1, 1], [], []>} : vector<8x4xbf16>, vector<4x384xbf16>, vector<8x384xf32> -> vector<8x384xf32>
    %10 = arith.addf %4, %9 : vector<8x384xf32>
    %c0_13 = arith.constant 0 : index
    %c0_14 = arith.constant 0 : index
    %c2 = arith.constant 2 : index
    %11 = vector.load %arg3[%c0_13, %c0_14, %c2] : memref<1x4x512xbf16, #tpu.memory_space<vmem>>, vector<1x4x384xbf16>
    %12 = vector.shape_cast %11 : vector<1x4x384xbf16> to vector<4x384xbf16>
    %c0_15 = arith.constant 0 : index
    %c2_16 = arith.constant 2 : index
    %c0_17 = arith.constant 0 : index
    %c0_18 = arith.constant 0 : index
    %13 = vector.load %arg2[%c0_15, %c2_16, %c0_17, %c0_18] : memref<1x9x8x4xbf16, #tpu.memory_space<vmem>>, vector<1x1x8x4xbf16>
    %14 = vector.shape_cast %13 : vector<1x1x8x4xbf16> to vector<8x4xbf16>
    %cst_19 = arith.constant dense<0.000000e+00> : vector<8x384xf32>
    %15 = tpu.matmul %14, %12, %cst_19 {dimension_numbers = #tpu.dot_dimension_numbers<[1], [0], [0], [1], [0, 0, 1, 1], [], []>} : vector<8x4xbf16>, vector<4x384xbf16>, vector<8x384xf32> -> vector<8x384xf32>
    %16 = arith.addf %10, %15 : vector<8x384xf32>
    %c0_20 = arith.constant 0 : index
    %c0_21 = arith.constant 0 : index
    %c18 = arith.constant 18 : index
    %17 = vector.load %arg3[%c0_20, %c0_21, %c18] : memref<1x4x512xbf16, #tpu.memory_space<vmem>>, vector<1x4x384xbf16>
    %18 = vector.shape_cast %17 : vector<1x4x384xbf16> to vector<4x384xbf16>
    %c0_22 = arith.constant 0 : index
    %c3 = arith.constant 3 : index
    %c0_23 = arith.constant 0 : index
    %c0_24 = arith.constant 0 : index
    %19 = vector.load %arg2[%c0_22, %c3, %c0_23, %c0_24] : memref<1x9x8x4xbf16, #tpu.memory_space<vmem>>, vector<1x1x8x4xbf16>
    %20 = vector.shape_cast %19 : vector<1x1x8x4xbf16> to vector<8x4xbf16>
    %cst_25 = arith.constant dense<0.000000e+00> : vector<8x384xf32>
    %21 = tpu.matmul %20, %18, %cst_25 {dimension_numbers = #tpu.dot_dimension_numbers<[1], [0], [0], [1], [0, 0, 1, 1], [], []>} : vector<8x4xbf16>, vector<4x384xbf16>, vector<8x384xf32> -> vector<8x384xf32>
    %22 = arith.addf %16, %21 : vector<8x384xf32>
    %c0_26 = arith.constant 0 : index
    %c0_27 = arith.constant 0 : index
    %c19 = arith.constant 19 : index
    %23 = vector.load %arg3[%c0_26, %c0_27, %c19] : memref<1x4x512xbf16, #tpu.memory_space<vmem>>, vector<1x4x384xbf16>
    %24 = vector.shape_cast %23 : vector<1x4x384xbf16> to vector<4x384xbf16>
    %c0_28 = arith.constant 0 : index
    %c4 = arith.constant 4 : index
    %c0_29 = arith.constant 0 : index
    %c0_30 = arith.constant 0 : index
    %25 = vector.load %arg2[%c0_28, %c4, %c0_29, %c0_30] : memref<1x9x8x4xbf16, #tpu.memory_space<vmem>>, vector<1x1x8x4xbf16>
    %26 = vector.shape_cast %25 : vector<1x1x8x4xbf16> to vector<8x4xbf16>
    %cst_31 = arith.constant dense<0.000000e+00> : vector<8x384xf32>
    %27 = tpu.matmul %26, %24, %cst_31 {dimension_numbers = #tpu.dot_dimension_numbers<[1], [0], [0], [1], [0, 0, 1, 1], [], []>} : vector<8x4xbf16>, vector<4x384xbf16>, vector<8x384xf32> -> vector<8x384xf32>
    %28 = arith.addf %22, %27 : vector<8x384xf32>
    %c0_32 = arith.constant 0 : index
    %c0_33 = arith.constant 0 : index
    %c20 = arith.constant 20 : index
    %29 = vector.load %arg3[%c0_32, %c0_33, %c20] : memref<1x4x512xbf16, #tpu.memory_space<vmem>>, vector<1x4x384xbf16>
    %30 = vector.shape_cast %29 : vector<1x4x384xbf16> to vector<4x384xbf16>
    %c0_34 = arith.constant 0 : index
    %c5 = arith.constant 5 : index
    %c0_35 = arith.constant 0 : index
    %c0_36 = arith.constant 0 : index
    %31 = vector.load %arg2[%c0_34, %c5, %c0_35, %c0_36] : memref<1x9x8x4xbf16, #tpu.memory_space<vmem>>, vector<1x1x8x4xbf16>
    %32 = vector.shape_cast %31 : vector<1x1x8x4xbf16> to vector<8x4xbf16>
    %cst_37 = arith.constant dense<0.000000e+00> : vector<8x384xf32>
    %33 = tpu.matmul %32, %30, %cst_37 {dimension_numbers = #tpu.dot_dimension_numbers<[1], [0], [0], [1], [0, 0, 1, 1], [], []>} : vector<8x4xbf16>, vector<4x384xbf16>, vector<8x384xf32> -> vector<8x384xf32>
    %34 = arith.addf %28, %33 : vector<8x384xf32>
    %c0_38 = arith.constant 0 : index
    %c0_39 = arith.constant 0 : index
    %c36 = arith.constant 36 : index
    %35 = vector.load %arg3[%c0_38, %c0_39, %c36] : memref<1x4x512xbf16, #tpu.memory_space<vmem>>, vector<1x4x384xbf16>
    %36 = vector.shape_cast %35 : vector<1x4x384xbf16> to vector<4x384xbf16>
    %c0_40 = arith.constant 0 : index
    %c6 = arith.constant 6 : index
    %c0_41 = arith.constant 0 : index
    %c0_42 = arith.constant 0 : index
    %37 = vector.load %arg2[%c0_40, %c6, %c0_41, %c0_42] : memref<1x9x8x4xbf16, #tpu.memory_space<vmem>>, vector<1x1x8x4xbf16>
    %38 = vector.shape_cast %37 : vector<1x1x8x4xbf16> to vector<8x4xbf16>
    %cst_43 = arith.constant dense<0.000000e+00> : vector<8x384xf32>
    %39 = tpu.matmul %38, %36, %cst_43 {dimension_numbers = #tpu.dot_dimension_numbers<[1], [0], [0], [1], [0, 0, 1, 1], [], []>} : vector<8x4xbf16>, vector<4x384xbf16>, vector<8x384xf32> -> vector<8x384xf32>
    %40 = arith.addf %34, %39 : vector<8x384xf32>
    %c0_44 = arith.constant 0 : index
    %c0_45 = arith.constant 0 : index
    %c37 = arith.constant 37 : index
    %41 = vector.load %arg3[%c0_44, %c0_45, %c37] : memref<1x4x512xbf16, #tpu.memory_space<vmem>>, vector<1x4x384xbf16>
    %42 = vector.shape_cast %41 : vector<1x4x384xbf16> to vector<4x384xbf16>
    %c0_46 = arith.constant 0 : index
    %c7 = arith.constant 7 : index
    %c0_47 = arith.constant 0 : index
    %c0_48 = arith.constant 0 : index
    %43 = vector.load %arg2[%c0_46, %c7, %c0_47, %c0_48] : memref<1x9x8x4xbf16, #tpu.memory_space<vmem>>, vector<1x1x8x4xbf16>
    %44 = vector.shape_cast %43 : vector<1x1x8x4xbf16> to vector<8x4xbf16>
    %cst_49 = arith.constant dense<0.000000e+00> : vector<8x384xf32>
    %45 = tpu.matmul %44, %42, %cst_49 {dimension_numbers = #tpu.dot_dimension_numbers<[1], [0], [0], [1], [0, 0, 1, 1], [], []>} : vector<8x4xbf16>, vector<4x384xbf16>, vector<8x384xf32> -> vector<8x384xf32>
    %46 = arith.addf %40, %45 : vector<8x384xf32>
    %c0_50 = arith.constant 0 : index
    %c0_51 = arith.constant 0 : index
    %c38 = arith.constant 38 : index
    %47 = vector.load %arg3[%c0_50, %c0_51, %c38] : memref<1x4x512xbf16, #tpu.memory_space<vmem>>, vector<1x4x384xbf16>
    %48 = vector.shape_cast %47 : vector<1x4x384xbf16> to vector<4x384xbf16>
    %c0_52 = arith.constant 0 : index
    %c8 = arith.constant 8 : index
    %c0_53 = arith.constant 0 : index
    %c0_54 = arith.constant 0 : index
    %49 = vector.load %arg2[%c0_52, %c8, %c0_53, %c0_54] : memref<1x9x8x4xbf16, #tpu.memory_space<vmem>>, vector<1x1x8x4xbf16>
    %50 = vector.shape_cast %49 : vector<1x1x8x4xbf16> to vector<8x4xbf16>
    %cst_55 = arith.constant dense<0.000000e+00> : vector<8x384xf32>
    %51 = tpu.matmul %50, %48, %cst_55 {dimension_numbers = #tpu.dot_dimension_numbers<[1], [0], [0], [1], [0, 0, 1, 1], [], []>} : vector<8x4xbf16>, vector<4x384xbf16>, vector<8x384xf32> -> vector<8x384xf32>
    %52 = arith.addf %46, %51 : vector<8x384xf32>
    %c0_56 = arith.constant 0 : index
    %c0_57 = arith.constant 0 : index
    %c0_58 = arith.constant 0 : index
    %53 = vector.load %arg4[%c0_56, %c0_57, %c0_58] : memref<1x8x384xf32, #tpu.memory_space<vmem>>, vector<1x8x384xf32>
    %54 = vector.shape_cast %53 : vector<1x8x384xf32> to vector<8x384xf32>
    %55 = vector.shape_cast %52 : vector<8x384xf32> to vector<1x8x384xf32>
    tpu.vector_store %arg4[%c0_56, %c0_57, %c0_58], %55 {strides = array<i32>} : memref<1x8x384xf32, #tpu.memory_space<vmem>>, vector<1x8x384xf32>,
    return
  }
  func.func @transform_0(%arg0: i32, %arg1: i32) -> (i32, i32, i32, i32) {
    %c0_i32 = arith.constant 0 : i32
    %c0_i32_0 = arith.constant 0 : i32
    %c0_i32_1 = arith.constant 0 : i32
    %c0_i32_2 = arith.constant 0 : i32
    return %arg0, %c0_i32, %c0_i32_0, %c0_i32_1 : i32, i32, i32, i32
  }
  func.func @transform_1(%arg0: i32, %arg1: i32) -> (i32, i32, i32) {
    %c0_i32 = arith.constant 0 : i32
    %c0_i32_0 = arith.constant 0 : i32
    %c0_i32_1 = arith.constant 0 : i32
    return %arg0, %c0_i32, %c0_i32_0 : i32, i32, i32
  }
  func.func @transform_2(%arg0: i32, %arg1: i32) -> (i32, i32, i32) {
    %c0_i32 = arith.constant 0 : i32
    %c0_i32_0 = arith.constant 0 : i32
    return %arg0, %c0_i32, %arg1 : i32, i32, i32
  }
}

</mosaic_0001>

<bundles_post_ra>
// kernel: tpu_custom_call.1
= control target key start
LH: loop header
LB: loop body
LE: loop exit
PB: predicated region body
PF: predicated region fallthrough
CT: control target
= control target key end

     0   :  { %7 = vsyncpa [#allocation3], 0  ;;  %s1942_s0 = inlined_call_operand.vmem [shape: bf16[2,9,8,4], index: 0, kind: input, shape index: {}]   ;;  %s1943_s1 = inlined_call_operand.vmem [shape: bf16[2,4,512], index: 1, kind: input, shape index: {}]   ;;  %s1944_s2 = inlined_call_operand.hbm [shape: f32[2,8,384], index: 2, kind: output, shape index: {}]  }
   0x1   :  { %9 = vsyncpa [#allocation3 + $0x1], 0  ;;  %s1720_s9 = smov 0   ;;  %s1722_s10 = smov 0  }
   0x2   :  { %s1724_s11 = smov 0   ;;  %s1726_s12 = smov 0  }
   0x3   :  { %s1728_s13 = smov 0   ;;  %s1730_s14 = smov 0  }
   0x4 LB: > { %s1423_s15 = sadd.s32 4294967295, %s1690_s14   ;;  %s1424_s16 = sadd.s32 4294967294, %s1690_s14   ;;  %s1690_s14 = sphi %s1730_s14, %s15_s14   ;;  %s1686_s13 = sphi %s1728_s13, %s1951_s13   ;;  %s1682_s12 = sphi %s1726_s12, %s1950_s12   ;;  %s1678_s11 = sphi %s1724_s11, %s1949_s11   ;;  %s1674_s10 = sphi %s1722_s10, %s1948_s10   ;;  %s1670_s9 = sphi %s1720_s9, %s1947_s9  }
   0x5   : > { %s27_s17 = sadd.s32 1, %s1686_s13  ;;  %s88_s18 = sadd.s32 1, %s1678_s11 }
   0x6   : > { %p29_p0 = scmp.ge.s32.totalorder %s27_s17, 2  ;;  %p98_p1 = scmp.ne.s32.totalorder %s1678_s11, %s1674_s10 }
   0x7   : > { %p99_p2 = scmp.eq.s32.totalorder %s1423_s15, 1  ;;  %p104_p3 = scmp.ne.s32.totalorder %s1674_s10, %s1670_s9 }
   0x8   : > { %s1953_s17 = smov (%p29_p0, %s27_s17), 0  ;;  %p105_p5 = scmp.eq.s32.totalorder %s1424_s16, 1 }
   0x9   : > { %p1760_p4 = por %p99_p2, %p98_p1  ;;  %s83_s20 = ssub.s32 %s1686_s13, %s1953_s17 }
   0xa   : > { %p1427_p6 = scmp.ge.s32.totalorder %s1690_s14, 1  ;;  %p86_p7 = scmp.eq.s32.totalorder %s83_s20, 0 }
   0xb   : > { %p1767_p8 = por %p105_p5, %p104_p3  ;;  %p139_p9 = scmp.lt.s32.totalorder %s1690_s14, 3 }
   0xc   : > { %s1773_s22 = scalar_select %p86_p7, %s1678_s11, %s88_s18  }
   0xd   : > { %p140_p10 = pnand %p1427_p6, %p139_p9 }
   0xe   : > { %p166_p11 = scmp.lt.s32.totalorder (!%p140_p10), %s1682_s12, 1  ;;  %s1696_s28 = smov (!%p140_p10), 127  }
   0xf   : > { %143 = sbr.rel (%p140_p10) target bundleno = 428 (0x1ac), region = 28  ;;  %s1697_s29 = smov (!%p140_p10), 126  }
  0x10   : > { %s1698_s30 = smov (!%p140_p10), 110   ;;  %s1699_s3 = smov (!%p140_p10), 109  }
  0x11   : > { %s1700_s4 = smov (!%p140_p10), 108   ;;  %s1701_s5 = smov (!%p140_p10), 92  }
  0x12   : > { %s1702_s6 = smov (!%p140_p10), 91   ;;  %s1703_s7 = smov (!%p140_p10), 90  }
  0x13   : > { %s163_s20 = sand.u32 (!%p140_p10), 1, %s1674_s10  }
  0x14   : > { %v188_v0 = vlaneseq  ;;  %v1692_v1 = vmov 1983009808   ;;  %s1777_s23 = scalar_select %p166_p11, %s1682_s12, 1  ;;  %v1693_v5 = vmov 0.0   ;;  %v1694_v6 = vmov 0  }
  0x15   : > { %v186_v2 = vunpack.c.l.s4 %v1692_v1  ;;  %1488 = vmatprep.subr.bf16.mxu1 %v1693_v5  ;;  %259 = vmatprep.mubr.bf16.mxu0 %v1694_v6  ;;  %vm1695_vm0 = vmmov 0   ;;  %vm209_vm1 = vcmask 1039360   ;;  %vm217_vm2 = vcmask 1041408  }
  0x16   : > { %v189_v3 = vshrl.u32 %v188_v0, 7  ;;  %s1469_s24 = sshll.u32 %s1777_s23, 3  ;;  %1490 = vmatprep.mubr.msk.bf16.mxu1 %vm1695_vm0, %v1693_v5  ;;  %s1543_s8 = smul.u32 36, %s1777_s23  ;;  %vm213_vm3 = vcmask 31744   ;;  %vm447_vm4 = vcmask 1031168   ;;  %vm576_vm5 = vcmask 900096  }
  0x17   : > { %v187_v4 = vunpack.c.0.s8 %v186_v2  ;;  %s175_s27 = scalar_lea.vmem %s1943_s1, %s1469_s24  ;;  %vm705_vm6 = vcmask 891904   ;;  %vm834_vm7 = vcmask 883712   ;;  %vm963_vm8 = vcmask 752640   ;;  %s1542_s23 = smul.u32 24, %s163_s20 }
  0x18   : > { %v180_v8 = vld [vmem:[%s175_s27] sm:$0xff]  ;;  %s1795_s18 = scalar_lea.vmem %s1942_s0, %s1543_s8  ;;  %vm1092_vm9 = vcmask 744448   ;;  %vm1221_vm10 = vcmask 736256   ;;  %s1544_s24 = smul.u32 384, %s1682_s12 }
  0x19   : > { %v190_v7 = vsub.s32 %v187_v4, %v189_v3  ;;  %v178_v9 = vld [vmem:[%s175_s27] sm:$0x3f]  ;;  %v184_v11 = vcombine.high %v180_v8, %v180_v8  ;;  %v1438_v48 = vld [vmem:[%s1795_s18 + $0x8] sm:$0xf]  ;;  %v1442_v58 = vld [vmem:[%s1795_s18 + $0xc] sm:$0xf] }
  0x1a   : > { %v309_v13 = vcombine.high %v178_v9, %v178_v9  ;;  %v1431_v27 = vld [vmem:[%s1795_s18 + $0x4] sm:$0xf]  ;;  %v179_v38 = vld [vmem:[%s1795_s18] sm:$0xf]  ;;  %v1446_v4 = vld [vmem:[%s1795_s18 + $0x10] sm:$0xf] }
  0x1b   : > { %v191_v10 = vrot.slane %v180_v8, %v190_v7  ;;  %v1787_v12 = vrot.slane %v178_v9, %v190_v7  ;;  %v198_v15 = vrot.slane %v184_v11, %v190_v7  ;;  %s165_s25 = scalar_lea.vmem [#allocation2], %s1542_s23  ;;  %s1325_s12 = scalar_lea.sflag [#allocation3], %s163_s20 }
  0x1c   : > { %v1789_v16 = vrot.slane %v309_v13, %v190_v7  ;;  %s1341_s26 = sshll.u32 %s165_s25, 4  ;;  %s1896_s26 = int_to_ptr.vmem [resolvable:$true] %s1341_s26 }
  0x1d   : > { %201 = vrot.lane.b32.xlu0 %v191_v10, %s1696_s28  ;;  %v199_v14 = vcombine.high %v191_v10, %v191_v10  ;;  %205 = vrot.lane.b32.xlu1 %v198_v15, %s1696_s28  ;;  %v200_v17 = vcombine.high %v198_v15, %v198_v15  ;;  %v324_v21 = vcombine.high %v1787_v12, %v1787_v12  ;;  %v329_v30 = vsel %vm217_vm2, %v1787_v12, 0 }
  0x1e   : > { %v335_v31 = vsel %vm217_vm2, %v1789_v16, 0  ;;  %v1450_v16 = vld [vmem:[%s1795_s18 + $0x14] sm:$0xf] }
  0x21   : > { %203 = vrot.lane.b32.xlu0 %v199_v14, %s1696_s28  ;;  %207 = vrot.lane.b32.xlu1 %v200_v17, %s1696_s28 }
  0x25   : > { %439 = vrot.lane.b32.xlu0 %v191_v10, %s1697_s29  ;;  %441 = vrot.lane.b32.xlu1 %v199_v14, %s1697_s29 }
  0x29   : > { %443 = vrot.lane.b32.xlu0 %v198_v15, %s1697_s29  ;;  %445 = vrot.lane.b32.xlu1 %v200_v17, %s1697_s29  ;;  %s1894_s29 = scalar_lea.hbm %s1944_s2, %s1544_s24 }
  0x2d   : > { %568 = vrot.lane.b32.xlu0 %v191_v10, %s1698_s30  ;;  %570 = vrot.lane.b32.xlu1 %v199_v14, %s1698_s30 }
  0x31   : > { %572 = vrot.lane.b32.xlu0 %v198_v15, %s1698_s30  ;;  %574 = vrot.lane.b32.xlu1 %v200_v17, %s1698_s30  ;;  %s1614_s30 = scalar_lea.vmem %s1896_s26, 384 }
  0x32   : > { %p1615_p12 = scmp.ne.s32.totalorder %s1896_s26, %s1614_s30 }
  0x34   : > { %p1616_p13 = pnand %p1615_p12, %p1760_p4 }
  0x35   : > { %697 = vrot.lane.b32.xlu0 %v191_v10, %s1699_s3  ;;  %699 = vrot.lane.b32.xlu1 %v199_v14, %s1699_s3 }
  0x36   : > { %p1617_p0 = pneg %p1616_p13 }
  0x39   : > { %701 = vrot.lane.b32.xlu0 %v198_v15, %s1699_s3  ;;  %703 = vrot.lane.b32.xlu1 %v200_v17, %s1699_s3  ;;  %s1704_s3 = smov [#allocation2]  }
  0x3d   : > { %826 = vrot.lane.b32.xlu0 %v191_v10, %s1700_s4  ;;  %828 = vrot.lane.b32.xlu1 %v199_v14, %s1700_s4 }
  0x41   : > { %830 = vrot.lane.b32.xlu0 %v198_v15, %s1700_s4  ;;  %832 = vrot.lane.b32.xlu1 %v200_v17, %s1700_s4  ;;  %s1618_s4 = sshll.u32 %s1704_s3, 4  ;;  %s1619_s4 = int_to_ptr.vmem [resolvable:$false] %s1618_s4 }
  0x42   : > { %p1621_p1 = scmp.lt.s32.totalorder %s1896_s26, %s1619_s4 }
  0x45   : > { %955 = vrot.lane.b32.xlu0 %v191_v10, %s1701_s5  ;;  %957 = vrot.lane.b32.xlu1 %v199_v14, %s1701_s5 }
  0x49   : > { %959 = vrot.lane.b32.xlu0 %v198_v15, %s1701_s5  ;;  %961 = vrot.lane.b32.xlu1 %v200_v17, %s1701_s5  ;;  %s1620_s5 = scalar_lea.vmem %s1619_s4, 768 }
  0x4a   : > { %p1622_p2 = scmp.lt.s32.totalorder %s1620_s5, %s1614_s30 }
  0x4c   : > { %p1623_p3 = por %p1622_p2, %p1621_p1 }
  0x4d   : > { %1084 = vrot.lane.b32.xlu0 %v191_v10, %s1702_s6  ;;  %1086 = vrot.lane.b32.xlu1 %v199_v14, %s1702_s6 }
  0x4e   : > { %p1624_p5 = pnand %p1623_p3, %p1617_p0 }
  0x51   : > { %1088 = vrot.lane.b32.xlu0 %v198_v15, %s1702_s6  ;;  %1090 = vrot.lane.b32.xlu1 %v200_v17, %s1702_s6 }
  0x55   : > { %1213 = vrot.lane.b32.xlu0 %v191_v10, %s1703_s7  ;;  %1215 = vrot.lane.b32.xlu1 %v199_v14, %s1703_s7 }
  0x59   : > { %1217 = vrot.lane.b32.xlu0 %v198_v15, %s1703_s7  ;;  %1219 = vrot.lane.b32.xlu1 %v200_v17, %s1703_s7 }
  0x8f   : > { %v202_v18 = vpop.permute.xlu0 %201  ;;  %v206_v19 = vpop.permute.xlu1 %205 }
  0x93   : > { %v204_v20 = vpop.permute.xlu0 %203  ;;  %v208_v24 = vpop.permute.xlu1 %207 }
  0x94   : > { %v211_v22 = vsel %vm209_vm1, %v204_v20, %v206_v19  ;;  %v210_v23 = vsel %vm209_vm1, %v202_v18, %v204_v20  ;;  %v212_v26 = vsel %vm209_vm1, %v206_v19, %v208_v24 }
  0x95   : > { %1432 = vmatprep.subr.msk.bf16.mxu0 %vm217_vm2, %v211_v22  ;;  %v219_v25 = vsel %vm217_vm2, %v210_v23, 0  ;;  %v225_v28 = vsel %vm217_vm2, %v212_v26, 0  ;;  %v1454_v26 = vld [vmem:[%s1795_s18 + $0x18] sm:$0xf] }
  0x96   : > { %242 = vmatpush1.bf16.msra.mxu0 %v219_v25  ;;  %1489 = vmatpush3.bf16.msra.mxu1 %v225_v28 }
  0x97   : > { %v440_v29 = vpop.permute.xlu0 %439  ;;  %1435 = vmatprep.subr.msk.bf16.mxu0 %vm217_vm2, %v324_v21  ;;  %1494 = vmatprep.subr.bf16.mxu1 %v1693_v5  ;;  %v442_v32 = vpop.permute.xlu1 %441 }
  0x98   : > { %v448_v34 = vsel %vm447_vm4, %v440_v29, %v442_v32 }
  0x99   : > { %1433 = vmatmul.mubr.msk.bf16.vlgmr.msra.gmra.mxu0 %vm213_vm3, %v1431_v27  ;;  %1491 = vmatmul.mubr.msk.bf16.vlgmr.msra.gmra.mxu1 %vm213_vm3, %v1431_v27  ;;  %v455_v39 = vsel %vm217_vm2, %v448_v34, 0 }
  0x9a   : > { %352 = vmatpush1.bf16.msra.mxu0 %v329_v30  ;;  %369 = vmatprep.mubr.bf16.mxu0 %v1694_v6 }
  0x9b   : > { %v444_v33 = vpop.permute.xlu0 %443  ;;  %1495 = vmatpush3.bf16.msra.mxu1 %v335_v31  ;;  %1496 = vmatprep.mubr.msk.bf16.mxu1 %vm1695_vm0, %v1693_v5  ;;  %v446_v36 = vpop.permute.xlu1 %445 }
  0x9c   : > { %v449_v35 = vsel %vm447_vm4, %v442_v32, %v444_v33  ;;  %1500 = vmatprep.subr.bf16.mxu1 %v1693_v5  ;;  %v450_v37 = vsel %vm447_vm4, %v444_v33, %v446_v36  ;;  %v1458_v36 = vld [vmem:[%s1795_s18 + $0x1c] sm:$0xf] }
  0x9d   : > { %1439 = vmatprep.subr.msk.bf16.mxu0 %vm217_vm2, %v449_v35  ;;  %v461_v41 = vsel %vm217_vm2, %v450_v37, 0 }
  0x9f   : > { %v569_v40 = vpop.permute.xlu0 %568  ;;  %v571_v42 = vpop.permute.xlu1 %570 }
  0xa0   : > { %v577_v44 = vsel %vm576_vm5, %v569_v40, %v571_v42 }
  0xa1   : > { %1436 = vmatmul.mubr.msk.bf16.vlgmr.msra.gmra.mxu0 %vm213_vm3, %v179_v38  ;;  %1497 = vmatmul.mubr.msk.bf16.vlgmr.msra.gmra.mxu1 %vm213_vm3, %v179_v38  ;;  %v584_v49 = vsel %vm217_vm2, %v577_v44, 0 }
  0xa2   : > { %478 = vmatpush1.bf16.msra.mxu0 %v455_v39  ;;  %495 = vmatprep.mubr.bf16.mxu0 %v1694_v6  ;;  %v1462_v39 = vld [vmem:[%s1795_s18 + $0x20] sm:$0xf] }
  0xa3   : > { %v573_v43 = vpop.permute.xlu0 %572  ;;  %1501 = vmatpush3.bf16.msra.mxu1 %v461_v41  ;;  %1502 = vmatprep.mubr.msk.bf16.mxu1 %vm1695_vm0, %v1693_v5  ;;  %v575_v46 = vpop.permute.xlu1 %574 }
  0xa4   : > { %v578_v45 = vsel %vm576_vm5, %v571_v42, %v573_v43  ;;  %1506 = vmatprep.subr.bf16.mxu1 %v1693_v5  ;;  %v579_v47 = vsel %vm576_vm5, %v573_v43, %v575_v46 }
  0xa5   : > { %1443 = vmatprep.subr.msk.bf16.mxu0 %vm217_vm2, %v578_v45  ;;  %v590_v51 = vsel %vm217_vm2, %v579_v47, 0 }
  0xa7   : > { %v698_v50 = vpop.permute.xlu0 %697  ;;  %v700_v52 = vpop.permute.xlu1 %699 }
  0xa8   : > { %v706_v54 = vsel %vm705_vm6, %v698_v50, %v700_v52 }
  0xa9   : > { %1440 = vmatmul.mubr.msk.bf16.vlgmr.msra.gmra.mxu0 %vm213_vm3, %v1438_v48  ;;  %1503 = vmatmul.mubr.msk.bf16.vlgmr.msra.gmra.mxu1 %vm213_vm3, %v1438_v48  ;;  %v713_v59 = vsel %vm217_vm2, %v706_v54, 0 }
  0xaa   : > { %607 = vmatpush1.bf16.msra.mxu0 %v584_v49  ;;  %624 = vmatprep.mubr.bf16.mxu0 %v1694_v6 }
  0xab   : > { %v702_v53 = vpop.permute.xlu0 %701  ;;  %1507 = vmatpush3.bf16.msra.mxu1 %v590_v51  ;;  %1508 = vmatprep.mubr.msk.bf16.mxu1 %vm1695_vm0, %v1693_v5  ;;  %v704_v56 = vpop.permute.xlu1 %703 }
  0xac   : > { %v707_v55 = vsel %vm705_vm6, %v700_v52, %v702_v53  ;;  %1512 = vmatprep.subr.bf16.mxu1 %v1693_v5  ;;  %v708_v57 = vsel %vm705_vm6, %v702_v53, %v704_v56 }
  0xad   : > { %1447 = vmatprep.subr.msk.bf16.mxu0 %vm217_vm2, %v707_v55  ;;  %v719_v61 = vsel %vm217_vm2, %v708_v57, 0 }
  0xaf   : > { %v827_v60 = vpop.permute.xlu0 %826  ;;  %v829_v62 = vpop.permute.xlu1 %828 }
  0xb0   : > { %v835_v0 = vsel %vm834_vm7, %v827_v60, %v829_v62 }
  0xb1   : > { %1444 = vmatmul.mubr.msk.bf16.vlgmr.msra.gmra.mxu0 %vm213_vm3, %v1442_v58  ;;  %1509 = vmatmul.mubr.msk.bf16.vlgmr.msra.gmra.mxu1 %vm213_vm3, %v1442_v58  ;;  %v842_v7 = vsel %vm217_vm2, %v835_v0, 0 }
  0xb2   : > { %736 = vmatpush1.bf16.msra.mxu0 %v713_v59  ;;  %753 = vmatprep.mubr.bf16.mxu0 %v1694_v6 }
  0xb3   : > { %v831_v63 = vpop.permute.xlu0 %830  ;;  %1513 = vmatpush3.bf16.msra.mxu1 %v719_v61  ;;  %1514 = vmatprep.mubr.msk.bf16.mxu1 %vm1695_vm0, %v1693_v5  ;;  %v833_v2 = vpop.permute.xlu1 %832 }
  0xb4   : > { %v836_v1 = vsel %vm834_vm7, %v829_v62, %v831_v63  ;;  %1518 = vmatprep.subr.bf16.mxu1 %v1693_v5  ;;  %v837_v3 = vsel %vm834_vm7, %v831_v63, %v833_v2 }
  0xb5   : > { %1451 = vmatprep.subr.msk.bf16.mxu0 %vm217_vm2, %v836_v1  ;;  %v848_v9 = vsel %vm217_vm2, %v837_v3, 0 }
  0xb7   : > { %v956_v8 = vpop.permute.xlu0 %955  ;;  %v958_v10 = vpop.permute.xlu1 %957 }
  0xb8   : > { %v964_v12 = vsel %vm963_vm8, %v956_v8, %v958_v10 }
  0xb9   : > { %1448 = vmatmul.mubr.msk.bf16.vlgmr.msra.gmra.mxu0 %vm213_vm3, %v1446_v4  ;;  %1515 = vmatmul.mubr.msk.bf16.vlgmr.msra.gmra.mxu1 %vm213_vm3, %v1446_v4  ;;  %v971_v17 = vsel %vm217_vm2, %v964_v12, 0 }
  0xba   : > { %865 = vmatpush1.bf16.msra.mxu0 %v842_v7  ;;  %882 = vmatprep.mubr.bf16.mxu0 %v1694_v6 }
  0xbb   : > { %v960_v11 = vpop.permute.xlu0 %959  ;;  %1519 = vmatpush3.bf16.msra.mxu1 %v848_v9  ;;  %1520 = vmatprep.mubr.msk.bf16.mxu1 %vm1695_vm0, %v1693_v5  ;;  %v962_v14 = vpop.permute.xlu1 %961 }
  0xbc   : > { %v965_v13 = vsel %vm963_vm8, %v958_v10, %v960_v11  ;;  %1524 = vmatprep.subr.bf16.mxu1 %v1693_v5  ;;  %v966_v15 = vsel %vm963_vm8, %v960_v11, %v962_v14 }
  0xbd   : > { %1455 = vmatprep.subr.msk.bf16.mxu0 %vm217_vm2, %v965_v13  ;;  %v977_v19 = vsel %vm217_vm2, %v966_v15, 0 }
  0xbf   : > { %v1085_v18 = vpop.permute.xlu0 %1084  ;;  %v1087_v20 = vpop.permute.xlu1 %1086 }
  0xc0   : > { %v1093_v22 = vsel %vm1092_vm9, %v1085_v18, %v1087_v20 }
  0xc1   : > { %1452 = vmatmul.mubr.msk.bf16.vlgmr.msra.gmra.mxu0 %vm213_vm3, %v1450_v16  ;;  %1521 = vmatmul.mubr.msk.bf16.vlgmr.msra.gmra.mxu1 %vm213_vm3, %v1450_v16  ;;  %v1100_v27 = vsel %vm217_vm2, %v1093_v22, 0 }
  0xc2   : > { %994 = vmatpush1.bf16.msra.mxu0 %v971_v17  ;;  %1011 = vmatprep.mubr.bf16.mxu0 %v1694_v6 }
  0xc3   : > { %v1089_v21 = vpop.permute.xlu0 %1088  ;;  %1525 = vmatpush3.bf16.msra.mxu1 %v977_v19  ;;  %1526 = vmatprep.mubr.msk.bf16.mxu1 %vm1695_vm0, %v1693_v5  ;;  %v1091_v24 = vpop.permute.xlu1 %1090 }
  0xc4   : > { %v1094_v23 = vsel %vm1092_vm9, %v1087_v20, %v1089_v21  ;;  %1530 = vmatprep.subr.bf16.mxu1 %v1693_v5  ;;  %v1095_v25 = vsel %vm1092_vm9, %v1089_v21, %v1091_v24 }
  0xc5   : > { %1459 = vmatprep.subr.msk.bf16.mxu0 %vm217_vm2, %v1094_v23  ;;  %v1106_v29 = vsel %vm217_vm2, %v1095_v25, 0 }
  0xc7   : > { %v1214_v28 = vpop.permute.xlu0 %1213  ;;  %v1216_v30 = vpop.permute.xlu1 %1215 }
  0xc8   : > { %v1222_v32 = vsel %vm1221_vm10, %v1214_v28, %v1216_v30 }
  0xc9   : > { %1456 = vmatmul.mubr.msk.bf16.vlgmr.msra.gmra.mxu0 %vm213_vm3, %v1454_v26  ;;  %1527 = vmatmul.mubr.msk.bf16.vlgmr.msra.gmra.mxu1 %vm213_vm3, %v1454_v26  ;;  %v1229_v37 = vsel %vm217_vm2, %v1222_v32, 0 }
  0xca   : > { %1123 = vmatpush1.bf16.msra.mxu0 %v1100_v27  ;;  %1140 = vmatprep.mubr.bf16.mxu0 %v1694_v6 }
  0xcb   : > { %v1218_v31 = vpop.permute.xlu0 %1217  ;;  %1531 = vmatpush3.bf16.msra.mxu1 %v1106_v29  ;;  %1532 = vmatprep.mubr.msk.bf16.mxu1 %vm1695_vm0, %v1693_v5  ;;  %v1220_v34 = vpop.permute.xlu1 %1219 }
  0xcc   : > { %v1223_v33 = vsel %vm1221_vm10, %v1216_v30, %v1218_v31  ;;  %1536 = vmatprep.subr.bf16.mxu1 %v1693_v5  ;;  %v1224_v35 = vsel %vm1221_vm10, %v1218_v31, %v1220_v34 }
  0xcd   : > { %1463 = vmatprep.subr.msk.bf16.mxu0 %vm217_vm2, %v1223_v33  ;;  %v1235_v38 = vsel %vm217_vm2, %v1224_v35, 0 }
  0xd1   : > { %1460 = vmatmul.mubr.msk.bf16.vlgmr.msra.gmra.mxu0 %vm213_vm3, %v1458_v36  ;;  %1533 = vmatmul.mubr.msk.bf16.vlgmr.msra.gmra.mxu1 %vm213_vm3, %v1458_v36 }
  0xd2   : > { %1252 = vmatpush1.bf16.msra.mxu0 %v1229_v37  ;;  %1269 = vmatprep.mubr.bf16.mxu0 %v1694_v6 }
  0xd3   : > { %1537 = vmatpush3.bf16.msra.mxu1 %v1235_v38  ;;  %1538 = vmatprep.mubr.msk.bf16.mxu1 %vm1695_vm0, %v1693_v5 }
  0xd9   : > { %1464 = vmatmul.mubr.msk.bf16.vlgmr.msra.gmra.mxu0 %vm213_vm3, %v1462_v39  ;;  %1539 = vmatmul.mubr.msk.bf16.vlgmr.msra.gmra.mxu1 %vm213_vm3, %v1462_v39 }
 0x159   : > { %v261_v40 = vpop.f32.mrf.mxu0  ;;  %v302_v42 = vpop.f32.mrf.mxu1 }
 0x15b   : > { %v263_v41 = vpop.f32.mrf.mxu0  ;;  %v1492_v44 = vpop.f32.mrf.mxu1 }
 0x15d   : > { %v265_v43 = vpop.f32.mrf.mxu0  ;;  %v305_v46 = vpop.f32.mrf.mxu1 }
 0x15f   : > { %v266_v45 = vpop.f32.mrf.mxu0  ;;  %v1493_v47 = vpop.f32.mrf.mxu1 }
 0x161   : > { %v371_v6 = vpop.f32.mrf.mxu0  ;;  %v412_v49 = vpop.f32.mrf.mxu1 }
 0x162   : > { %v372_v27 = vadd.f32 %v371_v6, %v261_v40  ;;  %v413_v31 = vadd.f32 %v412_v49, %v302_v42 }
 0x163   : > { %v373_v48 = vpop.f32.mrf.mxu0  ;;  %v1498_v51 = vpop.f32.mrf.mxu1 }
 0x164   : > { %v374_v30 = vadd.f32 %v373_v48, %v263_v41 }
 0x165   : > { %v375_v50 = vpop.f32.mrf.mxu0  ;;  %v415_v5 = vpop.f32.mrf.mxu1 }
 0x167   : > { %v376_v52 = vpop.f32.mrf.mxu0  ;;  %v1499_v53 = vpop.f32.mrf.mxu1 }
 0x169   : > { %v497_v54 = vpop.f32.mrf.mxu0  ;;  %v538_v56 = vpop.f32.mrf.mxu1 }
 0x16a   : > { %v544_v32 = vadd.f32 %v497_v54, %v372_v27  ;;  %v546_v36 = vadd.f32 %v538_v56, %v413_v31 }
 0x16b   : > { %v499_v55 = vpop.f32.mrf.mxu0  ;;  %v1504_v58 = vpop.f32.mrf.mxu1 }
 0x16c   : > { %v545_v35 = vadd.f32 %v499_v55, %v374_v30 }
 0x16d   : > { %v501_v57 = vpop.f32.mrf.mxu0  ;;  %v541_v60 = vpop.f32.mrf.mxu1 }
 0x16f   : > { %v502_v59 = vpop.f32.mrf.mxu0  ;;  %v1505_v61 = vpop.f32.mrf.mxu1 }
 0x171   : > { %v626_v62 = vpop.f32.mrf.mxu0  ;;  %v667_v0 = vpop.f32.mrf.mxu1 }
 0x172   : > { %v673_v37 = vadd.f32 %v626_v62, %v544_v32  ;;  %v675_v44 = vadd.f32 %v667_v0, %v546_v36 }
 0x173   : > { %v628_v63 = vpop.f32.mrf.mxu0  ;;  %v1510_v2 = vpop.f32.mrf.mxu1 }
 0x174   : > { %v674_v43 = vadd.f32 %v628_v63, %v545_v35 }
 0x175   : > { %v630_v1 = vpop.f32.mrf.mxu0  ;;  %v670_v4 = vpop.f32.mrf.mxu1 }
 0x177   : > { %v631_v3 = vpop.f32.mrf.mxu0  ;;  %v1511_v7 = vpop.f32.mrf.mxu1 }
 0x179   : > { %v755_v8 = vpop.f32.mrf.mxu0  ;;  %v796_v10 = vpop.f32.mrf.mxu1 }
 0x17a   : > { %v802_v45 = vadd.f32 %v755_v8, %v673_v37  ;;  %v804_v6 = vadd.f32 %v796_v10, %v675_v44 }
 0x17b   : > { %v757_v9 = vpop.f32.mrf.mxu0  ;;  %v1516_v12 = vpop.f32.mrf.mxu1 }
 0x17c   : > { %v803_v47 = vadd.f32 %v757_v9, %v674_v43 }
 0x17d   : > { %v759_v11 = vpop.f32.mrf.mxu0  ;;  %v799_v14 = vpop.f32.mrf.mxu1 }
 0x17f   : > { %v760_v13 = vpop.f32.mrf.mxu0  ;;  %v1517_v15 = vpop.f32.mrf.mxu1 }
 0x181   : > { %v884_v16 = vpop.f32.mrf.mxu0  ;;  %v925_v18 = vpop.f32.mrf.mxu1 }
 0x182   : > { %v931_v41 = vadd.f32 %v884_v16, %v802_v45  ;;  %v933_v50 = vadd.f32 %v925_v18, %v804_v6 }
 0x183   : > { %v886_v17 = vpop.f32.mrf.mxu0  ;;  %v1522_v20 = vpop.f32.mrf.mxu1 }
 0x184   : > { %v932_v49 = vadd.f32 %v886_v17, %v803_v47 }
 0x185   : > { %v888_v19 = vpop.f32.mrf.mxu0  ;;  %v928_v22 = vpop.f32.mrf.mxu1 }
 0x187   : > { %v889_v21 = vpop.f32.mrf.mxu0  ;;  %v1523_v23 = vpop.f32.mrf.mxu1 }
 0x189   : > { %v1013_v24 = vpop.f32.mrf.mxu0  ;;  %v1054_v26 = vpop.f32.mrf.mxu1 }
 0x18a   : > { %v1060_v51 = vadd.f32 %v1013_v24, %v931_v41  ;;  %v1062_v54 = vadd.f32 %v1054_v26, %v933_v50 }
 0x18b   : > { %v1015_v25 = vpop.f32.mrf.mxu0  ;;  %v1528_v29 = vpop.f32.mrf.mxu1 }
 0x18c   : > { %v1061_v53 = vadd.f32 %v1015_v25, %v932_v49 }
 0x18d   : > { %v1017_v28 = vpop.f32.mrf.mxu0  ;;  %v1057_v34 = vpop.f32.mrf.mxu1 }
 0x18f   : > { %v1018_v33 = vpop.f32.mrf.mxu0  ;;  %v1529_v38 = vpop.f32.mrf.mxu1 }
 0x191   : > { %v1142_v39 = vpop.f32.mrf.mxu0  ;;  %v1183_v40 = vpop.f32.mrf.mxu1 }
 0x192   : > { %v1189_v55 = vadd.f32 %v1142_v39, %v1060_v51  ;;  %v1191_v59 = vadd.f32 %v1183_v40, %v1062_v54 }
 0x193   : > { %v1144_v46 = vpop.f32.mrf.mxu0  ;;  %v1534_v48 = vpop.f32.mrf.mxu1 }
 0x194   : > { %v1190_v58 = vadd.f32 %v1144_v46, %v1061_v53 }
 0x195   : > { %v1146_v42 = vpop.f32.mrf.mxu0  ;;  %v1186_v5 = vpop.f32.mrf.mxu1 }
 0x197   : > { %v1147_v52 = vpop.f32.mrf.mxu0  ;;  %v1535_v56 = vpop.f32.mrf.mxu1 }
 0x199   : > { %v1271_v57 = vpop.f32.mrf.mxu0  ;;  %v1312_v62 = vpop.f32.mrf.mxu1 }
 0x19a   : > { %v1318_v60 = vadd.f32 %v1271_v57, %v1189_v55  ;;  %v1320_v0 = vadd.f32 %v1312_v62, %v1191_v59 }
 0x19b   : > { %v1273_v61 = vpop.f32.mrf.mxu0  ;;  %v1540_v2 = vpop.f32.mrf.mxu1 }
 0x19c   : > { %1321 = vst [vmem:[%s165_s25] sm:$0xff] %v1318_v60  ;;  %v1319_v63 = vadd.f32 %v1273_v61, %v1190_v58  ;;  %1323 = vst [vmem:[%s165_s25 + $0x10] sm:$0xff] %v1320_v0 }
 0x19d   : > { %v1275_v1 = vpop.f32.mrf.mxu0  ;;  %v1315_v4 = vpop.f32.mrf.mxu1 }
 0x19e   : > { %1322 = vst [vmem:[%s165_s25 + $0x8] sm:$0xff] %v1319_v63 }
 0x19f   : > { %v1276_v3 = vpop.f32.mrf.mxu0 }
 0x1a0   : > { %1627 = shalt.err (!%p1624_p5)
}
 0x1a1   : > { %s1628_s6 = scalar_lea.hbm %s1894_s29, 384  ;;  %s1632_s15 = scalar_lea.hbm %s1944_s2, 768 }
 0x1a2   : > { %p1629_p6 = scmp.ne.s32.totalorder %s1894_s29, %s1628_s6  ;;  %p1633_p10 = scmp.lt.s32.totalorder %s1894_s29, %s1944_s2 }
 0x1a3   : > { %p1634_p11 = scmp.lt.s32.totalorder %s1632_s15, %s1628_s6 }
 0x1a4   : > { %p1630_p7 = pnand %p1629_p6, %p1760_p4 }
 0x1a5   : > { %p1635_p12 = por %p1634_p11, %p1633_p10 }
 0x1a6   : > { %p1631_p9 = pneg %p1630_p7 }
 0x1a8   : > { %p1636_p13 = pnand %p1635_p12, %p1631_p9 }
 0x1aa   : > { %1639 = shalt.err (!%p1636_p13)
}
 0x1ab   : > { %1545 = dma.vmem_to_hbm [thread:$0]  (%p1760_p4), %s1896_s26, 384, %s1894_s29, %s1325_s12   ;;  %v1541_v7 = vpop.f32.mrf.mxu1 }
 0x1ac PF: > { %p1551_p0 = scmp.ge.s32.totalorder %s1690_s14, 2  ;;  %s1353_s20 = sand.u32 1, %s1670_s9  }
 0x1ad   : > { %s1354_s23 = scalar_lea.sflag [#allocation3], %s1353_s20 }
 0x1ae   : > { %p1548_p1 = pnand %p1551_p0, %p1767_p8 }
 0x1b0   : > { %p1549_p2 = pneg %p1548_p1 }
 0x1b2   : > { %1665 = dma.done.wait (%p1549_p2), %s1354_s23, 384  }
 0x1b3   : > { %1667 = vsyncadd (%p1549_p2), %s1354_s23, 4294966912  ;;  %s15_s14 = sadd.s32 1, %s1690_s14   ;;  %s1947_s9 = smov %s1674_s10 }
 0x1b4   : > { %p12_p3 = scmp.ge.s32.totalorder %s15_s14, 4   ;;  %s1948_s10 = smov %s1678_s11 }
 0x1b5   : > { %s1949_s11 = smov %s1773_s22  ;;  %s1950_s12 = smov %s1686_s13 }
 0x1b6   : > { %s1951_s13 = smov %s1953_s17  ;;  %14 = sbr.rel (!%p12_p3) target bundleno = 4 (0x4), region = 74 }
 0x1bb   :  { %1359 = vsyncpa [#allocation3], 1 }
 0x1bc   :  { %1361 = vsyncpa [#allocation3 + $0x1], 1 }

</bundles_post_ra>
